<compile_context>
chip_gen: v7x
topology: tpu7x:2x2x1
jax: 0.10.0
libtpu: 0.0.40
codegen_flags: <defaults>
</compile_context>

<pallas_src>
import jax
import jax.numpy as jnp
from jax.experimental import pallas as pl
from jax.experimental.pallas import tpu as pltpu


def _dqn_kernel(x_ref, w1_ref, b1_ref, w2_ref, b2_ref, w3_ref, b3_ref, o_ref):
    x = x_ref[...]

    # fc1 (+ folded bn1) -> relu   (bf16 MXU matmul, f32 accumulate, f32 VPU)
    h1 = jnp.dot(x, w1_ref[...], preferred_element_type=jnp.float32) + b1_ref[...]
    h1 = jnp.maximum(h1, 0.0)

    # dropout(p=0.25) in eval mode == identity

    # fc2 (+ folded bn2) -> relu
    h2 = jnp.dot(h1.astype(w2_ref.dtype), w2_ref[...],
                 preferred_element_type=jnp.float32) + b2_ref[...]
    h2 = jnp.maximum(h2, 0.0)

    # fc3
    o_ref[...] = (jnp.dot(h2.astype(w3_ref.dtype), w3_ref[...],
                          preferred_element_type=jnp.float32)
                  + b3_ref[...]).astype(o_ref.dtype)


def _round_up(n, m):
    return ((n + m - 1) // m) * m


def enhanced_dqn_forward(x, kparams, *, tb=256):
    """Forward pass.  x: (B, state_size) or (state_size,).  kparams: fold_params() output."""
    if x.ndim == 1:
        x = x[None, :]
    B, S = x.shape

    w1, b1 = kparams["w1"], kparams["b1"]
    w2, b2 = kparams["w2"], kparams["b2"]
    w3, b3 = kparams["w3"], kparams["b3"]
    H1, H2, A = w1.shape[1], w2.shape[1], w3.shape[1]

    # Batch tile: multiple of 8 sublanes (f32/bf16-safe), capped at `tb`.
    TB = min(int(tb), _round_up(B, 8))
    B_pad = _round_up(B, TB)

    x_p = x.astype(w1.dtype)                      # bf16 activations for the MXU
    if B_pad != B:
        x_p = jnp.pad(x_p, ((0, B_pad - B), (0, 0)))

    const = lambda i: (0, 0)                      # weights stay resident across grid steps

    out = pl.pallas_call(
        _dqn_kernel,
        out_shape=jax.ShapeDtypeStruct((B_pad, A), jnp.float32),
        grid=(B_pad // TB,),
        in_specs=[
            pl.BlockSpec((TB, S), lambda i: (i, 0)),   # x: tiled along batch
            pl.BlockSpec((S, H1), const),
            pl.BlockSpec((1, H1), const),
            pl.BlockSpec((H1, H2), const),
            pl.BlockSpec((1, H2), const),
            pl.BlockSpec((H2, A), const),
            pl.BlockSpec((1, A), const),
        ],
        # Lane-dense-as-possible output: last dim is the full action axis.
        out_specs=pl.BlockSpec((TB, A), lambda i: (i, 0)),
        compiler_params=pltpu.CompilerParams(
            dimension_semantics=("parallel",)),        # shards batch across TCs on v7x
    )(x_p, w1, b1, w2, b2, w3, b3)

    return out[:B] if B_pad != B else out


def init_params(key, state_size, action_size):
    """Raw (PyTorch-equivalent) parameters. Linear: U(-1/sqrt(fan_in), +);
    BatchNorm1d: gamma=1, beta=0, running_mean=0, running_var=1."""
    keys = jax.random.split(key, 6)

    def linear(kw, kb, fan_in, fan_out):
        bound = 1.0 / jnp.sqrt(jnp.float32(fan_in))
        # stored as (in, out) == transpose of PyTorch's (out, in)
        w = jax.random.uniform(kw, (fan_in, fan_out), jnp.float32, -bound, bound)
        b = jax.random.uniform(kb, (fan_out,), jnp.float32, -bound, bound)
        return w, b

    w1, b1 = linear(keys[0], keys[1], state_size, 128)
    w2, b2 = linear(keys[2], keys[3], 128, 64)
    w3, b3 = linear(keys[4], keys[5], 64, action_size)

    def bn(n):
        return dict(gamma=jnp.ones((n,), jnp.float32),
                    beta=jnp.zeros((n,), jnp.float32),
                    mean=jnp.zeros((n,), jnp.float32),
                    var=jnp.ones((n,), jnp.float32))

    bn1, bn2 = bn(128), bn(64)
    return dict(
        w1=w1, b1=b1, w2=w2, b2=b2, w3=w3, b3=b3,
        bn1_gamma=bn1["gamma"], bn1_beta=bn1["beta"], bn1_mean=bn1["mean"], bn1_var=bn1["var"],
        bn2_gamma=bn2["gamma"], bn2_beta=bn2["beta"], bn2_mean=bn2["mean"], bn2_var=bn2["var"],
    )


def fold_params(raw, eps=1e-5):
    """Fold eval-mode BatchNorm into the linear weights/biases, cast once.

    Weights -> bf16 (MXU), biases -> f32 (1, N) rows (VPU adds stay f32).
    """
    s1 = raw["bn1_gamma"] / jnp.sqrt(raw["bn1_var"] + eps)
    t1 = raw["bn1_beta"] - raw["bn1_mean"] * s1
    s2 = raw["bn2_gamma"] / jnp.sqrt(raw["bn2_var"] + eps)
    t2 = raw["bn2_beta"] - raw["bn2_mean"] * s2

    w1f = raw["w1"] * s1[None, :]
    b1f = raw["b1"] * s1 + t1
    w2f = raw["w2"] * s2[None, :]
    b2f = raw["b2"] * s2 + t2

    return dict(
        w1=w1f.astype(jnp.bfloat16), b1=b1f.reshape(1, -1).astype(jnp.float32),
        w2=w2f.astype(jnp.bfloat16), b2=b2f.reshape(1, -1).astype(jnp.float32),
        w3=raw["w3"].astype(jnp.bfloat16), b3=raw["b3"].reshape(1, -1).astype(jnp.float32),
    )


def _reference_forward(x, raw, eps=1e-5):
    """Pure-JAX f32 eval-mode reference."""
    if x.ndim == 1:
        x = x[None, :]
    s1 = raw["bn1_gamma"] / jnp.sqrt(raw["bn1_var"] + eps)
    t1 = raw["bn1_beta"] - raw["bn1_mean"] * s1
    s2 = raw["bn2_gamma"] / jnp.sqrt(raw["bn2_var"] + eps)
    t2 = raw["bn2_beta"] - raw["bn2_mean"] * s2
    h1 = jnp.maximum((x @ raw["w1"] + raw["b1"]) * s1 + t1, 0.0)
    h2 = jnp.maximum((h1 @ raw["w2"] + raw["b2"]) * s2 + t2, 0.0)
    return h2 @ raw["w3"] + raw["b3"]


if __name__ == "__main__":
    state_size = 32
    action_size = 8
    batch = 8

    key = jax.random.PRNGKey(0)
    k_param, k_x, k_x2 = jax.random.split(key, 3)

    raw = init_params(k_param, state_size, action_size)
    kparams = fold_params(raw)          # fold BN + cast/reshape once, reuse per call

    # Small-batch check (single grid step).
    x = jax.random.normal(k_x, (batch, state_size), jnp.float32)
    out = jax.block_until_ready(enhanced_dqn_forward(x, kparams))
    ref = _reference_forward(x, raw)
    assert out.shape == (batch, action_size)
    assert jnp.allclose(out, ref, atol=5e-2, rtol=5e-2)   # bf16 matmuls, f32 accumulation

    # Multi-grid-step + batch-padding check (exercises the batched/tiled path).
    x2 = jax.random.normal(k_x2, (40, state_size), jnp.float32)
    out2 = jax.block_until_ready(enhanced_dqn_forward(x2, kparams, tb=16))
    ref2 = _reference_forward(x2, raw)
    assert out2.shape == (40, action_size)
    assert jnp.allclose(out2, ref2, atol=5e-2, rtol=5e-2)

    print("KERNEL_OK")
</pallas_src>

<mosaic_0001>
module attributes {stable_mosaic.version = 11 : i64} {
  func.func @_dqn_kernel(%arg0: i32, %arg1: memref<8x32xbf16, #tpu.memory_space<vmem>>, %arg2: memref<32x128xbf16, #tpu.memory_space<vmem>>, %arg3: memref<1x128xf32, #tpu.memory_space<vmem>>, %arg4: memref<128x64xbf16, #tpu.memory_space<vmem>>, %arg5: memref<1x64xf32, #tpu.memory_space<vmem>>, %arg6: memref<64x8xbf16, #tpu.memory_space<vmem>>, %arg7: memref<1x8xf32, #tpu.memory_space<vmem>>, %arg8: memref<8x8xf32, #tpu.memory_space<vmem>>) attributes {dimension_semantics = [#tpu.dimension_semantics<parallel>], iteration_bounds = array<i64: 1>, scalar_prefetch = 0 : i64, scratch_operands = 0 : i64, tpu.core_type = #tpu.core_type<tc>, window_params = [{transform_indices = @transform_0, window_bounds = array<i64: 8, 32>}, {pipeline_mode = #tpu.pipeline_mode<synchronous>, transform_indices = @transform_1, window_bounds = array<i64: 32, 128>}, {pipeline_mode = #tpu.pipeline_mode<synchronous>, transform_indices = @transform_2, window_bounds = array<i64: 1, 128>}, {pipeline_mode = #tpu.pipeline_mode<synchronous>, transform_indices = @transform_3, window_bounds = array<i64: 128, 64>}, {pipeline_mode = #tpu.pipeline_mode<synchronous>, transform_indices = @transform_4, window_bounds = array<i64: 1, 64>}, {pipeline_mode = #tpu.pipeline_mode<synchronous>, transform_indices = @transform_5, window_bounds = array<i64: 64, 8>}, {pipeline_mode = #tpu.pipeline_mode<synchronous>, transform_indices = @transform_6, window_bounds = array<i64: 1, 8>}, {transform_indices = @transform_7, window_bounds = array<i64: 8, 8>}]} {
    %c0 = arith.constant 0 : index
    %c0_0 = arith.constant 0 : index
    %0 = vector.load %arg1[%c0, %c0_0] : memref<8x32xbf16, #tpu.memory_space<vmem>>, vector<8x32xbf16>
    %c0_1 = arith.constant 0 : index
    %c0_2 = arith.constant 0 : index
    %1 = vector.load %arg2[%c0_1, %c0_2] : memref<32x128xbf16, #tpu.memory_space<vmem>>, vector<32x128xbf16>
    %cst = arith.constant dense<0.000000e+00> : vector<8x128xf32>
    %2 = tpu.matmul %0, %1, %cst {dimension_numbers = #tpu.dot_dimension_numbers<[1], [0], [0], [1], [0, 0, 1, 1], [], []>} : vector<8x32xbf16>, vector<32x128xbf16>, vector<8x128xf32> -> vector<8x128xf32>
    %c0_3 = arith.constant 0 : index
    %c0_4 = arith.constant 0 : index
    %3 = vector.load %arg3[%c0_3, %c0_4] : memref<1x128xf32, #tpu.memory_space<vmem>>, vector<1x128xf32>
    %4 = vector.broadcast %3 : vector<1x128xf32> to vector<8x128xf32>
    %5 = arith.addf %2, %4 : vector<8x128xf32>
    %cst_5 = arith.constant 0.000000e+00 : f32
    %6 = vector.broadcast %cst_5 : f32 to vector<8x128xf32>
    %7 = arith.maximumf %5, %6 : vector<8x128xf32>
    %8 = arith.truncf %7 : vector<8x128xf32> to vector<8x128xbf16>
    %c0_6 = arith.constant 0 : index
    %c0_7 = arith.constant 0 : index
    %9 = vector.load %arg4[%c0_6, %c0_7] : memref<128x64xbf16, #tpu.memory_space<vmem>>, vector<128x64xbf16>
    %cst_8 = arith.constant dense<0.000000e+00> : vector<8x64xf32>
    %10 = tpu.matmul %8, %9, %cst_8 {dimension_numbers = #tpu.dot_dimension_numbers<[1], [0], [0], [1], [0, 0, 1, 1], [], []>} : vector<8x128xbf16>, vector<128x64xbf16>, vector<8x64xf32> -> vector<8x64xf32>
    %c0_9 = arith.constant 0 : index
    %c0_10 = arith.constant 0 : index
    %11 = vector.load %arg5[%c0_9, %c0_10] : memref<1x64xf32, #tpu.memory_space<vmem>>, vector<1x64xf32>
    %12 = vector.broadcast %11 : vector<1x64xf32> to vector<8x64xf32>
    %13 = arith.addf %10, %12 : vector<8x64xf32>
    %cst_11 = arith.constant 0.000000e+00 : f32
    %14 = vector.broadcast %cst_11 : f32 to vector<8x64xf32>
    %15 = arith.maximumf %13, %14 : vector<8x64xf32>
    %16 = arith.truncf %15 : vector<8x64xf32> to vector<8x64xbf16>
    %c0_12 = arith.constant 0 : index
    %c0_13 = arith.constant 0 : index
    %17 = vector.load %arg6[%c0_12, %c0_13] : memref<64x8xbf16, #tpu.memory_space<vmem>>, vector<64x8xbf16>
    %cst_14 = arith.constant dense<0.000000e+00> : vector<8x8xf32>
    %18 = tpu.matmul %16, %17, %cst_14 {dimension_numbers = #tpu.dot_dimension_numbers<[1], [0], [0], [1], [0, 0, 1, 1], [], []>} : vector<8x64xbf16>, vector<64x8xbf16>, vector<8x8xf32> -> vector<8x8xf32>
    %c0_15 = arith.constant 0 : index
    %c0_16 = arith.constant 0 : index
    %19 = vector.load %arg7[%c0_15, %c0_16] : memref<1x8xf32, #tpu.memory_space<vmem>>, vector<1x8xf32>
    %20 = vector.broadcast %19 : vector<1x8xf32> to vector<8x8xf32>
    %21 = arith.addf %18, %20 : vector<8x8xf32>
    %c0_17 = arith.constant 0 : index
    %c0_18 = arith.constant 0 : index
    %22 = vector.load %arg8[%c0_17, %c0_18] : memref<8x8xf32, #tpu.memory_space<vmem>>, vector<8x8xf32>
    tpu.vector_store %arg8[%c0_17, %c0_18], %21 {strides = array<i32>} : memref<8x8xf32, #tpu.memory_space<vmem>>, vector<8x8xf32>,
    return
  }
  func.func @transform_0(%arg0: i32) -> (i32, i32) {
    %c0_i32 = arith.constant 0 : i32
    %c0_i32_0 = arith.constant 0 : i32
    return %arg0, %c0_i32 : i32, i32
  }
  func.func @transform_1(%arg0: i32) -> (i32, i32) {
    %c0_i32 = arith.constant 0 : i32
    %c0_i32_0 = arith.constant 0 : i32
    %c0_i32_1 = arith.constant 0 : i32
    return %c0_i32, %c0_i32_0 : i32, i32
  }
  func.func @transform_2(%arg0: i32) -> (i32, i32) {
    %c0_i32 = arith.constant 0 : i32
    %c0_i32_0 = arith.constant 0 : i32
    %c0_i32_1 = arith.constant 0 : i32
    return %c0_i32, %c0_i32_0 : i32, i32
  }
  func.func @transform_3(%arg0: i32) -> (i32, i32) {
    %c0_i32 = arith.constant 0 : i32
    %c0_i32_0 = arith.constant 0 : i32
    %c0_i32_1 = arith.constant 0 : i32
    return %c0_i32, %c0_i32_0 : i32, i32
  }
  func.func @transform_4(%arg0: i32) -> (i32, i32) {
    %c0_i32 = arith.constant 0 : i32
    %c0_i32_0 = arith.constant 0 : i32
    %c0_i32_1 = arith.constant 0 : i32
    return %c0_i32, %c0_i32_0 : i32, i32
  }
  func.func @transform_5(%arg0: i32) -> (i32, i32) {
    %c0_i32 = arith.constant 0 : i32
    %c0_i32_0 = arith.constant 0 : i32
    %c0_i32_1 = arith.constant 0 : i32
    return %c0_i32, %c0_i32_0 : i32, i32
  }
  func.func @transform_6(%arg0: i32) -> (i32, i32) {
    %c0_i32 = arith.constant 0 : i32
    %c0_i32_0 = arith.constant 0 : i32
    %c0_i32_1 = arith.constant 0 : i32
    return %c0_i32, %c0_i32_0 : i32, i32
  }
  func.func @transform_7(%arg0: i32) -> (i32, i32) {
    %c0_i32 = arith.constant 0 : i32
    %c0_i32_0 = arith.constant 0 : i32
    return %arg0, %c0_i32 : i32, i32
  }
}

</mosaic_0001>

<bundles_post_ra>
// kernel: tpu_custom_call.1
= control target key start
LH: loop header
LB: loop body
LE: loop exit
PB: predicated region body
PF: predicated region fallthrough
CT: control target
= control target key end

     0   :  { %v427_v1 = vmov 0.0   ;;  %vm428_vm0 = vmmov 0   ;;  %vm52_vm1 = vcmask 261120   ;;  %s539_s0 = inlined_call_operand.vmem [shape: bf16[8,32], index: 0, kind: input, shape index: {}]   ;;  %s540_s1 = inlined_call_operand.vmem [shape: bf16[32,128], index: 1, kind: input, shape index: {}]   ;;  %s541_s2 = inlined_call_operand.vmem [shape: f32[1,128], index: 2, kind: input, shape index: {}]   ;;  %s542_s3 = inlined_call_operand.vmem [shape: bf16[128,64], index: 3, kind: input, shape index: {}]   ;;  %s543_s4 = inlined_call_operand.vmem [shape: f32[1,64], index: 4, kind: input, shape index: {}]   ;;  %s544_s5 = inlined_call_operand.vmem [shape: bf16[64,8], index: 5, kind: input, shape index: {}]   ;;  %s545_s6 = inlined_call_operand.vmem [shape: f32[1,8], index: 6, kind: input, shape index: {}]   ;;  %s546_s7 = inlined_call_operand.hbm [shape: f32[8,8], index: 7, kind: output, shape index: {}]  }
   0x1   :  { %v389_v0 = vld [vmem:[%s540_s1] sm:$0xff]   ;;  %346 = vmatprep.subr.bf16.mxu0 %v427_v1  ;;  %354 = vmatprep.subr.bf16.mxu1 %v427_v1  ;;  %v390_v2 = vld [vmem:[%s540_s1 + $0x8] sm:$0xff]   ;;  %v393_v6 = vld [vmem:[%s542_s3 + $0x10] sm:$0xff]  }
   0x2   :  { %347 = vmatpush3.bf16.msra.mxu0 %v389_v0  ;;  %350 = vmatprep.mubr.msk.bf16.mxu0 %vm428_vm0, %v427_v1  ;;  %v391_v3 = vld [vmem:[%s542_s3] sm:$0xff]   ;;  %v392_v4 = vld [vmem:[%s542_s3 + $0x8] sm:$0xff]   ;;  %v394_v7 = vld [vmem:[%s542_s3 + $0x18] sm:$0xff]  }
   0x3   :  { %348 = vmatprep.subr.bf16.mxu0 %v427_v1  ;;  %370 = vmatprep.mubr.msk.bf16.mxu1 %vm428_vm0, %v427_v1  ;;  %v28_v5 = vld [vmem:[%s539_s0] sm:$0xf] }
   0x4   :  { %355 = vmatpush3.bf16.msra.mxu1 %v391_v3 }
   0x5   :  { %356 = vmatprep.subr.bf16.mxu1 %v427_v1 }
   0x6   :  { %349 = vmatpush3.bf16.msra.mxu0 %v390_v2 }
   0x7   :  { %374 = vmatprep.subr.bf16.mxu0 %v427_v1 }
   0x8   :  { %357 = vmatpush3.bf16.msra.mxu1 %v392_v4 }
   0x9   :  { %351 = vmatmul.mubr.msk.bf16.vlgmr.msra.gmra.mrb[0].mxu0 %vm52_vm1, %v28_v5  ;;  %358 = vmatprep.subr.bf16.mxu1 %v427_v1 }
   0xa   :  { %382 = vmatprep.mubr.msk.bf16.mxu0 %vm428_vm0, %v427_v1 }
   0xc   :  { %359 = vmatpush3.bf16.msra.mxu1 %v393_v6 }
   0xd   :  { %12 = vsyncpa [#allocation3], 0  ;;  %360 = vmatprep.subr.bf16.mxu1 %v427_v1  ;;  %v395_v8 = vld [vmem:[%s542_s3 + $0x20] sm:$0xff]   ;;  %v396_v9 = vld [vmem:[%s542_s3 + $0x28] sm:$0xff]   ;;  %vm250_vm2 = vcmask 523264   ;;  %s429_s10 = smov [#allocation2]  }
   0xe   :  { %v397_v10 = vld [vmem:[%s542_s3 + $0x30] sm:$0xff]   ;;  %v398_v11 = vld [vmem:[%s542_s3 + $0x38] sm:$0xff]   ;;  %v399_v12 = vld [vmem:[%s544_s5] sm:$0xff]   ;;  %vm294_vm3 = vcmask 64512  }
   0xf   :  { %375 = vmatpush3.bf16.msra.mxu0 %v399_v12  ;;  %v400_v13 = vld [vmem:[%s544_s5 + $0x8] sm:$0xff]   ;;  %v310_v14 = vld [vmem:[%s541_s2] ss:$0 sm:$0xff]  ;;  %v401_v22 = vld [vmem:[%s544_s5 + $0x10] sm:$0xff]  }
  0x10   :  { %361 = vmatpush3.bf16.msra.mxu1 %v394_v7  ;;  %376 = vmatprep.subr.bf16.mxu0 %v427_v1  ;;  %v402_v23 = vld [vmem:[%s544_s5 + $0x18] sm:$0xff]   ;;  %v314_v24 = vld [vmem:[%s543_s4] ss:$0 sm:$0xff]  ;;  %s302_s5 = sshll.u32 %s429_s10, 4  ;;  %s303_s5 = int_to_ptr.vmem [resolvable:$true] %s302_s5 }
  0x11   :  { %362 = vmatprep.subr.bf16.mxu1 %v427_v1  ;;  %v323_v32 = vld [vmem:[%s545_s6] ss:$0 sm:$0xff]  ;;  %s403_s4 = scalar_lea.vmem %s303_s5, 128  ;;  %p408_p1 = scmp.lt.s32.totalorder %s303_s5, %s303_s5 }
  0x12   :  { %p404_p0 = scmp.ne.s32.totalorder %s303_s5, %s403_s4  ;;  %p409_p2 = scmp.lt.s32.totalorder %s403_s4, %s403_s4 }
  0x13   :  { %377 = vmatpush3.bf16.msra.mxu0 %v400_v13 }
  0x14   :  { %363 = vmatpush3.bf16.msra.mxu1 %v395_v8  ;;  %378 = vmatprep.subr.bf16.mxu0 %v427_v1  ;;  %p410_p3 = por %p409_p2, %p408_p1 }
  0x15   :  { %364 = vmatprep.subr.bf16.mxu1 %v427_v1 }
  0x16   :  { %p411_p4 = pnand %p410_p3, %p404_p0 }
  0x17   :  { %379 = vmatpush3.bf16.msra.mxu0 %v401_v22 }
  0x18   :  { %365 = vmatpush3.bf16.msra.mxu1 %v396_v9  ;;  %380 = vmatprep.subr.bf16.mxu0 %v427_v1 }
  0x19   :  { %366 = vmatprep.subr.bf16.mxu1 %v427_v1 }
  0x1b   :  { %381 = vmatpush3.bf16.msra.mxu0 %v402_v23 }
  0x1c   :  { %367 = vmatpush3.bf16.msra.mxu1 %v397_v10 }
  0x1d   :  { %368 = vmatprep.subr.bf16.mxu1 %v427_v1 }
  0x20   :  { %369 = vmatpush3.bf16.msra.mxu1 %v398_v11 }
  0xdc   :  { %v90_v15 = vpop.f32.mrb[0].mxu0 }
  0xdd   :  { %v91_v16 = vadd.f32 %v310_v14, %v90_v15  ;;  %v352_v17 = vpop.f32.mrb[1].mxu0 }
  0xde   :  { %v93_v18 = vpop.f32.mrb[2].mxu0 }
  0xdf   :  { %v96_v19 = vmax.f32 %v91_v16, 0.0  ;;  %v353_v20 = vpop.f32.mrb[3].mxu0 }
  0xe1   :  { %v97_v21 = vpack.c.bf16 %v96_v19, %v96_v19 }
  0xe3   :  { %371 = vmatmul.mubr.bf16.vlgmr.msra.gmra.mrb[0].mxu1 %v97_v21 }
 0x1b6   :  { %v203_v25 = vpop.f32.mrb[0].mxu1 }
 0x1b7   :  { %v204_v26 = vadd.f32 %v314_v24, %v203_v25  ;;  %v372_v27 = vpop.f32.mrb[1].mxu1 }
 0x1b8   :  { %v206_v28 = vpop.f32.mrb[2].mxu1 }
 0x1b9   :  { %v209_v29 = vmax.f32 %v204_v26, 0.0  ;;  %v373_v30 = vpop.f32.mrb[3].mxu1 }
 0x1bb   :  { %v210_v31 = vpack.c.bf16 %v209_v29, %v209_v29 }
 0x1bd   :  { %383 = vmatmul.mubr.msk.bf16.vlgmr.msra.gmra.mrb[4].mxu0 %vm250_vm2, %v210_v31 }
 0x290   :  { %v288_v33 = vpop.f32.mrb[4].mxu0 }
 0x291   :  { %v289_v34 = vadd.f32 %v323_v32, %v288_v33  ;;  %v384_v35 = vpop.f32.mrb[5].mxu0 }
 0x292   :  { %v291_v36 = vpop.f32.mrb[6].mxu0 }
 0x293   :  { %v385_v37 = vpop.f32.mrb[7].mxu0  ;;  %295 = vst.msk [vmem:[#allocation2] sm:$0xff] %vm294_vm3, %v289_v34 }
 0x294   :  { %414 = shalt.err (!%p411_p4)
}
 0x295   :  { %s415_s6 = scalar_lea.hbm %s546_s7, 128 }
 0x296   :  { %p416_p5 = scmp.ne.s32.totalorder %s546_s7, %s415_s6  ;;  %p419_p6 = scmp.lt.u32.totalorder %s415_s6, %s546_s7 }
 0x298   :  { %p421_p7 = pnand %p419_p6, %p416_p5 }
 0x29a   :  { %424 = shalt.err (!%p421_p7)
}
 0x29b   :  { %305 = dma.vmem_to_hbm [thread:$0]  %s303_s5, 128, %s546_s7, [#allocation3]  }
 0x29c   :  { %425 = dma.done.wait [#allocation3], 128  }
 0x29d   :  { %426 = vsyncadd [#allocation3], 4294967168 }
 0x29e   :  { %309 = vsyncpa [#allocation3], 1 }

</bundles_post_ra>
